<compile_context>
chip_gen: v6e
topology: v6e:2x2x1
jax: 0.10.0
libtpu: 0.0.40
codegen_flags: <defaults>
</compile_context>

<pallas_src>
import functools

import jax
import jax.numpy as jnp
from jax import lax
from jax.experimental import pallas as pl
from jax.experimental.pallas import tpu as pltpu


def _saigb_kernel(x_ref, w_ref, b_ref, t_ref, o_ref, *, num_FMs):
    """One batch tile per grid step.

    x_ref : (Nb, Cb, HW)                      input (NCHW, spatial flattened)
    w_ref : (Cout, Cb)                        1x1-conv weights, rows reordered (m-major)
    b_ref : (Cout, 1)                         conv bias (f32), same row order
    t_ref : (num_vert, T)                     template (shared across batch)
    o_ref : (Nb, num_vert, num_FMs*HW + T)    init_graph output
    """
    Nb, Cb, HW = x_ref.shape
    num_vert, T = t_ref.shape
    F = num_FMs * HW

    x = x_ref[...]                                             # (Nb, Cb, HW), loaded once

    # One batched contraction per FM band.  Each band's result is exactly the
    # lane-dense, 128-aligned output column band it is stored to, so there is no
    # per-batch Python unroll (bounded vreg pressure, fast compiles) and no
    # sublane-crossing slices of a large intermediate.
    for m in range(num_FMs):                                   # num_FMs is small & static
        w_m = w_ref[m * num_vert:(m + 1) * num_vert, :]        # (nv, Cb)
        b_m = b_ref[m * num_vert:(m + 1) * num_vert, :]        # (nv, 1)
        w_b = jnp.broadcast_to(w_m[None], (Nb, num_vert, Cb))  # hoisted, once per band
        y = jnp.einsum('bvc,bcs->bvs', w_b, x,
                       preferred_element_type=jnp.float32)     # (Nb, nv, HW) on the MXU
        y = y + b_m[None, :, :]
        y = jnp.maximum(y, 0.1 * y)                            # LeakyReLU(0.1), exact
        o_ref[:, :, m * HW:(m + 1) * HW] = y.astype(o_ref.dtype)

    # "torch.cat((feature, template), dim=2)": single store for the whole tile.
    tmpl = t_ref[...].astype(o_ref.dtype)
    o_ref[:, :, F:F + T] = jnp.broadcast_to(tmpl[None], (Nb, num_vert, T))


def _round_up(v, m):
    return ((v + m - 1) // m) * m


def _vmem_budgets():
    """(per-buffer-set budget, scoped-VMEM cap) in bytes, per TPU generation.

    v7x: 64 MiB VMEM per TensorCore -> keep the double-buffered footprint small.
    v5e / v6e: 128 MiB physical (but small default scoped limits) -> bigger tiles
    plus an explicit vmem_limit_bytes.
    """
    budget, cap = 12 << 20, 40 << 20
    try:
        vmem = getattr(pltpu.get_tpu_info(), "vmem_capacity_bytes", 0)
        if vmem >= (100 << 20):                 # v5e / v6e class parts
            budget, cap = 28 << 20, 96 << 20
    except Exception:
        pass
    return budget, cap


def saigb_forward(x, conv_w, conv_b, template, num_FMs, num_vert, batch_block=None):
    """x: (N, Cb, H, W). Returns init_graph: (N, num_vert, num_FMs*H*W + T)."""
    N, Cb, H, W = x.shape
    HW = H * W
    Cout = num_FMs * num_vert
    assert conv_w.shape == (Cout, Cb, 1, 1)
    nvert, T = template.shape
    assert nvert == num_vert
    F = num_FMs * HW
    out_dtype = x.dtype                         # bf16 in -> bf16 out halves HBM traffic

    # --- layout-only prep (tiny arrays / free contiguous reshape; no full HBM passes) ---
    x2 = x.reshape(N, Cb, HW)                                          # contiguous => free
    w2 = conv_w[:, :, 0, 0].reshape(num_vert, num_FMs, Cb)             # [v, m, c]
    w_re = jnp.transpose(w2, (1, 0, 2)).reshape(Cout, Cb)              # row = m*nv + v
    b_re = jnp.transpose(conv_b.reshape(num_vert, num_FMs), (1, 0))
    b_re = b_re.reshape(Cout, 1).astype(jnp.float32)

    # --- batch tile sizing against a double-buffer-aware, lane-padding-aware budget ---
    hw_pad = _round_up(HW, 128)                 # minor-dim lane padding in VMEM
    row_pad = _round_up(F + T, 128)
    per_elem = 4 * (Cb * hw_pad                 # x block
                    + num_vert * row_pad        # out block (lane padded)
                    + num_vert * hw_pad)        # one FM band of f32 intermediates
    budget, vmem_cap = _vmem_budgets()
    if batch_block is None:
        nb = max(1, min(N, budget // max(per_elem, 1)))
    else:
        nb = max(1, min(N, batch_block))
    if N > 1:
        nb = min(nb, pl.cdiv(N, 2))             # >=2 grid steps: both TCs busy on v7x
    grid = (pl.cdiv(N, nb),)                    # partial last block is clipped by Pallas

    in_block = 4 * nb * Cb * hw_pad
    out_block = 4 * nb * num_vert * row_pad
    vmem_limit = 2 * (in_block + out_block) + (8 << 20)   # double buffers + params/scratch
    vmem_limit = int(min(max(vmem_limit, 16 << 20), vmem_cap))

    # TODO(synk): for very large num_vert*num_FMs or H*W, add a vertex/FM or spatial grid
    # axis so per-step blocks stay within the VMEM budget instead of collapsing nb -> 1.

    kernel = functools.partial(_saigb_kernel, num_FMs=num_FMs)

    cost = pl.CostEstimate(
        flops=2 * N * Cout * Cb * HW,
        transcendentals=0,
        bytes_accessed=(x2.size * x2.dtype.itemsize
                        + w_re.size * w_re.dtype.itemsize
                        + b_re.size * b_re.dtype.itemsize
                        + template.size * template.dtype.itemsize
                        + N * num_vert * (F + T) * jnp.dtype(out_dtype).itemsize),
    )

    out = pl.pallas_call(
        kernel,
        out_shape=jax.ShapeDtypeStruct((N, num_vert, F + T), out_dtype),
        grid_spec=pltpu.PrefetchScalarGridSpec(
            num_scalar_prefetch=0,
            grid=grid,
            in_specs=[
                pl.BlockSpec((nb, Cb, HW), lambda n: (n, 0, 0)),
                pl.BlockSpec((Cout, Cb), lambda n: (0, 0)),
                pl.BlockSpec((Cout, 1), lambda n: (0, 0)),
                pl.BlockSpec((num_vert, T), lambda n: (0, 0)),
            ],
            out_specs=pl.BlockSpec((nb, num_vert, F + T), lambda n: (n, 0, 0)),
        ),
        compiler_params=pltpu.CompilerParams(
            dimension_semantics=("parallel",),
            vmem_limit_bytes=vmem_limit,
        ),
        cost_estimate=cost,
    )(x2, w_re, b_re, template)
    return out


def _reference(x, conv_w, conv_b, template, num_FMs, num_vert):
    """Pure-JAX reference mirroring the PyTorch SAIGB.forward."""
    N, Cb, H, W = x.shape
    y = lax.conv_general_dilated(
        x, conv_w, window_strides=(1, 1), padding="VALID",
        dimension_numbers=("NCHW", "OIHW", "NCHW"))
    y = y + conv_b.reshape(1, -1, 1, 1)
    y = jnp.where(y > 0, y, 0.1 * y)                                   # LeakyReLU(0.1)
    feat = y.reshape(N, num_vert, num_FMs * H * W)                     # .view(...)
    tmpl = jnp.broadcast_to(template[None], (N,) + template.shape)     # .repeat(N,1,1)
    return jnp.concatenate([feat, tmpl], axis=2)                       # cat(dim=2)


if __name__ == "__main__":
    # Small shapes consistent with the module's forward.
    N, Cb, H, W = 2, 4, 16, 16          # batch, backbone_channels, spatial
    num_FMs, num_vert, T = 2, 8, 3      # feature maps per vertex, vertices, template dim
    feature_size = H * W
    Cout = num_FMs * num_vert

    key = jax.random.PRNGKey(0)
    kx, kw, kb, kt, kx2 = jax.random.split(key, 5)

    x = jax.random.normal(kx, (N, Cb, H, W), jnp.float32)
    conv_w = jax.random.normal(kw, (Cout, Cb, 1, 1), jnp.float32) * 0.1
    conv_b = jax.random.normal(kb, (Cout,), jnp.float32) * 0.1
    template = jax.random.normal(kt, (num_vert, T), jnp.float32)

    out = saigb_forward(x, conv_w, conv_b, template, num_FMs, num_vert)
    out = jax.block_until_ready(out)
    ref = _reference(x, conv_w, conv_b, template, num_FMs, num_vert)
    assert out.shape == (N, num_vert, num_FMs * feature_size + T)
    assert jnp.allclose(out, ref, atol=1e-4, rtol=1e-4)

    # Non-divisible batch: exercises the cdiv grid + partial last block path.
    x3 = jax.random.normal(kx2, (3, Cb, H, W), jnp.float32)
    out3 = jax.block_until_ready(
        saigb_forward(x3, conv_w, conv_b, template, num_FMs, num_vert, batch_block=2))
    ref3 = _reference(x3, conv_w, conv_b, template, num_FMs, num_vert)
    assert out3.shape == (3, num_vert, num_FMs * feature_size + T)
    assert jnp.allclose(out3, ref3, atol=1e-4, rtol=1e-4)

    print("KERNEL_OK")
</pallas_src>

<mosaic_0001>
module attributes {stable_mosaic.version = 11 : i64} {
  func.func @_saigb_kernel(%arg0: i32, %arg1: memref<1x4x256xf32, #tpu.memory_space<vmem>>, %arg2: memref<16x4xf32, #tpu.memory_space<vmem>>, %arg3: memref<16x1xf32, #tpu.memory_space<vmem>>, %arg4: memref<8x3xf32, #tpu.memory_space<vmem>>, %arg5: memref<1x8x515xf32, #tpu.memory_space<vmem>>) attributes {dimension_semantics = [#tpu.dimension_semantics<parallel>], iteration_bounds = array<i64: 2>, scalar_prefetch = 0 : i64, scratch_operands = 0 : i64, tpu.core_type = #tpu.core_type<tc>, window_params = [{transform_indices = @transform_0, window_bounds = array<i64: 1, 4, 256>}, {pipeline_mode = #tpu.pipeline_mode<synchronous>, transform_indices = @transform_1, window_bounds = array<i64: 16, 4>}, {pipeline_mode = #tpu.pipeline_mode<synchronous>, transform_indices = @transform_2, window_bounds = array<i64: 16, 1>}, {pipeline_mode = #tpu.pipeline_mode<synchronous>, transform_indices = @transform_3, window_bounds = array<i64: 8, 3>}, {transform_indices = @transform_4, window_bounds = array<i64: 1, 8, 515>}]} {
    %c0 = arith.constant 0 : index
    %c0_0 = arith.constant 0 : index
    %c0_1 = arith.constant 0 : index
    %0 = vector.load %arg1[%c0, %c0_0, %c0_1] : memref<1x4x256xf32, #tpu.memory_space<vmem>>, vector<1x4x256xf32>
    %c0_2 = arith.constant 0 : index
    %c0_3 = arith.constant 0 : index
    %1 = vector.load %arg2[%c0_2, %c0_3] : memref<16x4xf32, #tpu.memory_space<vmem>>, vector<8x4xf32>
    %c0_4 = arith.constant 0 : index
    %c0_5 = arith.constant 0 : index
    %2 = vector.load %arg3[%c0_4, %c0_5] : memref<16x1xf32, #tpu.memory_space<vmem>>, vector<8x1xf32>
    %3 = vector.shape_cast %1 : vector<8x4xf32> to vector<1x8x4xf32>
    "tpu.trace_start"() <{level = 10 : i32, message = "bvc,bcs->bvs"}> : () -> ()
    %cst = arith.constant dense<0.000000e+00> : vector<1x8x256xf32>
    %4 = tpu.matmul %3, %0, %cst {dimension_numbers = #tpu.dot_dimension_numbers<[2], [1], [1], [2], [0, 0, 0, 1, 1, 2], [0], [0]>} : vector<1x8x4xf32>, vector<1x4x256xf32>, vector<1x8x256xf32> -> vector<1x8x256xf32>
    "tpu.trace_stop"() : () -> ()
    %5 = vector.shape_cast %2 : vector<8x1xf32> to vector<1x8x1xf32>
    %6 = vector.broadcast %5 : vector<1x8x1xf32> to vector<1x8x256xf32>
    %7 = arith.addf %4, %6 : vector<1x8x256xf32>
    %cst_6 = arith.constant 1.000000e-01 : f32
    %8 = vector.broadcast %cst_6 : f32 to vector<1x8x256xf32>
    %9 = arith.mulf %8, %7 : vector<1x8x256xf32>
    %10 = arith.maximumf %7, %9 : vector<1x8x256xf32>
    %c0_7 = arith.constant 0 : index
    %c0_8 = arith.constant 0 : index
    %c0_9 = arith.constant 0 : index
    %11 = vector.load %arg5[%c0_7, %c0_8, %c0_9] : memref<1x8x515xf32, #tpu.memory_space<vmem>>, vector<1x8x256xf32>
    tpu.vector_store %arg5[%c0_7, %c0_8, %c0_9], %10 {strides = array<i32>} : memref<1x8x515xf32, #tpu.memory_space<vmem>>, vector<1x8x256xf32>,
    %c8 = arith.constant 8 : index
    %c0_10 = arith.constant 0 : index
    %12 = vector.load %arg2[%c8, %c0_10] : memref<16x4xf32, #tpu.memory_space<vmem>>, vector<8x4xf32>
    %c8_11 = arith.constant 8 : index
    %c0_12 = arith.constant 0 : index
    %13 = vector.load %arg3[%c8_11, %c0_12] : memref<16x1xf32, #tpu.memory_space<vmem>>, vector<8x1xf32>
    %14 = vector.shape_cast %12 : vector<8x4xf32> to vector<1x8x4xf32>
    "tpu.trace_start"() <{level = 10 : i32, message = "bvc,bcs->bvs"}> : () -> ()
    %cst_13 = arith.constant dense<0.000000e+00> : vector<1x8x256xf32>
    %15 = tpu.matmul %14, %0, %cst_13 {dimension_numbers = #tpu.dot_dimension_numbers<[2], [1], [1], [2], [0, 0, 0, 1, 1, 2], [0], [0]>} : vector<1x8x4xf32>, vector<1x4x256xf32>, vector<1x8x256xf32> -> vector<1x8x256xf32>
    "tpu.trace_stop"() : () -> ()
    %16 = vector.shape_cast %13 : vector<8x1xf32> to vector<1x8x1xf32>
    %17 = vector.broadcast %16 : vector<1x8x1xf32> to vector<1x8x256xf32>
    %18 = arith.addf %15, %17 : vector<1x8x256xf32>
    %cst_14 = arith.constant 1.000000e-01 : f32
    %19 = vector.broadcast %cst_14 : f32 to vector<1x8x256xf32>
    %20 = arith.mulf %19, %18 : vector<1x8x256xf32>
    %21 = arith.maximumf %18, %20 : vector<1x8x256xf32>
    %c0_15 = arith.constant 0 : index
    %c0_16 = arith.constant 0 : index
    %c256 = arith.constant 256 : index
    %22 = vector.load %arg5[%c0_15, %c0_16, %c256] : memref<1x8x515xf32, #tpu.memory_space<vmem>>, vector<1x8x256xf32>
    tpu.vector_store %arg5[%c0_15, %c0_16, %c256], %21 {strides = array<i32>} : memref<1x8x515xf32, #tpu.memory_space<vmem>>, vector<1x8x256xf32>,
    %c0_17 = arith.constant 0 : index
    %c0_18 = arith.constant 0 : index
    %23 = vector.load %arg4[%c0_17, %c0_18] : memref<8x3xf32, #tpu.memory_space<vmem>>, vector<8x3xf32>
    %24 = vector.shape_cast %23 : vector<8x3xf32> to vector<1x8x3xf32>
    %c0_19 = arith.constant 0 : index
    %c0_20 = arith.constant 0 : index
    %c512 = arith.constant 512 : index
    %25 = vector.load %arg5[%c0_19, %c0_20, %c512] : memref<1x8x515xf32, #tpu.memory_space<vmem>>, vector<1x8x3xf32>
    tpu.vector_store %arg5[%c0_19, %c0_20, %c512], %24 {strides = array<i32>} : memref<1x8x515xf32, #tpu.memory_space<vmem>>, vector<1x8x3xf32>,
    return
  }
  func.func @transform_0(%arg0: i32) -> (i32, i32, i32) {
    %c0_i32 = arith.constant 0 : i32
    %c0_i32_0 = arith.constant 0 : i32
    %c0_i32_1 = arith.constant 0 : i32
    return %arg0, %c0_i32, %c0_i32_0 : i32, i32, i32
  }
  func.func @transform_1(%arg0: i32) -> (i32, i32) {
    %c0_i32 = arith.constant 0 : i32
    %c0_i32_0 = arith.constant 0 : i32
    %c0_i32_1 = arith.constant 0 : i32
    return %c0_i32, %c0_i32_0 : i32, i32
  }
  func.func @transform_2(%arg0: i32) -> (i32, i32) {
    %c0_i32 = arith.constant 0 : i32
    %c0_i32_0 = arith.constant 0 : i32
    %c0_i32_1 = arith.constant 0 : i32
    return %c0_i32, %c0_i32_0 : i32, i32
  }
  func.func @transform_3(%arg0: i32) -> (i32, i32) {
    %c0_i32 = arith.constant 0 : i32
    %c0_i32_0 = arith.constant 0 : i32
    %c0_i32_1 = arith.constant 0 : i32
    return %c0_i32, %c0_i32_0 : i32, i32
  }
  func.func @transform_4(%arg0: i32) -> (i32, i32, i32) {
    %c0_i32 = arith.constant 0 : i32
    %c0_i32_0 = arith.constant 0 : i32
    %c0_i32_1 = arith.constant 0 : i32
    return %arg0, %c0_i32, %c0_i32_0 : i32, i32, i32
  }
}

</mosaic_0001>

<bundles_post_ra>
// kernel: tpu_custom_call.1
= control target key start
LH: loop header
LB: loop body
LE: loop exit
PB: predicated region body
PF: predicated region fallthrough
CT: control target
= control target key end

     0   :  { %9 = vsyncpa [#allocation3], 0  ;;  %s719_s0 = inlined_call_operand.vmem [shape: f32[2,4,256], index: 0, kind: input, shape index: {}]   ;;  %s720_s1 = inlined_call_operand.vmem [shape: f32[16,4], index: 1, kind: input, shape index: {}]   ;;  %s721_s2 = inlined_call_operand.vmem [shape: f32[16,1], index: 2, kind: input, shape index: {}]   ;;  %s722_s3 = inlined_call_operand.vmem [shape: f32[8,3], index: 3, kind: input, shape index: {}]   ;;  %s723_s4 = inlined_call_operand.hbm [shape: f32[2,8,515], index: 4, kind: output, shape index: {}]  }
   0x1   :  { %11 = vsyncpa [#allocation3 + $0x1], 0  ;;  %s607_s15 = smov 0   ;;  %s609_s16 = smov 0  }
   0x2   :  { %s611_s17 = smov 0   ;;  %s613_s18 = smov 0  }
   0x3 LB: > { %s628_s19 = sadd.s32 4294967295, %s577_s18   ;;  %s456_s20 = sadd.s32 4294967294, %s577_s18   ;;  %s577_s18 = sphi %s613_s18, %s729_s18   ;;  %s573_s17 = sphi %s611_s17, %s728_s17   ;;  %s569_s16 = sphi %s609_s16, %s727_s16   ;;  %s565_s15 = sphi %s607_s15, %s726_s15  }
   0x4   : > { %s632_s21 = sadd.s32 1, %s577_s18   ;;  %s113_s22 = sadd.s32 1, %s573_s17 }
   0x5   : > { %s110_s23 = ssub.s32 %s577_s18, %s632_s21  ;;  %p123_p0 = scmp.ne.s32.totalorder %s573_s17, %s569_s16 }
   0x6   : > { %p111_p1 = scmp.eq.s32.totalorder %s110_s23, 0  ;;  %p124_p2 = scmp.eq.s32.totalorder %s628_s19, 1 }
   0x7   : > { %p129_p3 = scmp.ne.s32.totalorder %s569_s16, %s565_s15  ;;  %p130_p4 = scmp.eq.s32.totalorder %s456_s20, 1 }
   0x8   : > { %s643_s24 = scalar_select %p111_p1, %s573_s17, %s113_s22  }
   0x9   : > { %p645_p5 = por %p124_p2, %p123_p0  ;;  %p649_p6 = por %p130_p4, %p129_p3 }
   0xa   : > { %p459_p7 = scmp.ge.s32.totalorder %s577_s18, 1  ;;  %p165_p8 = scmp.lt.s32.totalorder %s577_s18, 3 }
   0xc   : > { %p166_p9 = pnand %p459_p7, %p165_p8 }
   0xd   : > { %p191_p10 = scmp.lt.s32.totalorder (!%p166_p9), %s628_s19, 1  ;;  %s188_s14 = sand.u32 (!%p166_p9), 1, %s569_s16  }
   0xe   : > { %169 = sbr.rel (%p166_p9) target bundleno = 243 (0xf3), region = 36  ;;  %s581_s8 = smov (!%p166_p9), [#allocation2]  }
   0xf   : > { %s472_s20 = smul.u32 (!%p166_p9), 40, %s188_s14 }
  0x10   : > { %s473_s28 = smul.u32 (!%p166_p9), 640, %s628_s19 }
  0x11   : > { %s190_s27 = scalar_lea.vmem (!%p166_p9), [#allocation2], %s472_s20 }
  0x12   : > { %s682_s6 = scalar_lea.hbm (!%p166_p9), %s723_s4, %s473_s28 }
  0x13   : > { %v579_v0 = vmov 0.0   ;;  %v198_v1 = vld [vmem:[%s721_s2] sm:$0xff]  ;;  %s192_s29 = scalar_select %p191_p10, %s628_s19, 1  ;;  %v580_v2 = vmov 0   ;;  %v293_v3 = vld [vmem:[%s721_s2 + $0x8] sm:$0xff]  ;;  %vm210_vm0 = vcmask 1043456  }
  0x14   : > { %279 = vmatprep.mubr.f32.mxu0 %v579_v0  ;;  %366 = vmatprep.mubr.f32.mxu1 %v579_v0  ;;  %v197_v6 = vld [vmem:[%s720_s1] sm:$0xff]  ;;  %vm206_vm1 = vcmask 31744   ;;  %v292_v7 = vld [vmem:[%s720_s1 + $0x8] sm:$0xff]  ;;  %vm380_vm2 = vcmask 23552   ;;  %s383_s19 = scalar_lea.sflag [#allocation3], %s188_s14 }
  0x15   : > { %515 = vset.pattern.permute.xlu0 %v580_v2  ;;  %s471_s30 = sshll.u32 %s192_s29, 3  ;;  %v379_v8 = vld [vmem:[%s722_s3] sm:$0xff]  ;;  %s397_s29 = sshll.u32 %s190_s27, 4  ;;  %s398_s29 = int_to_ptr.vmem [resolvable:$true] %s397_s29 }
  0x16   : > { %201 = vperm.xlu0 %515, %v198_v1   ;;  %s195_s9 = scalar_lea.vmem %s719_s0, %s471_s30  ;;  %381 = vst.msk [vmem:[%s190_s27 + $0x20] sm:$0xff] %vm380_vm2, %v379_v8  ;;  %s517_s7 = scalar_lea.vmem %s398_s29, 640 }
  0x17   : > { %v196_v4 = vld [vmem:[%s195_s9] sm:$0xff]  ;;  %p518_p11 = scmp.ne.s32.totalorder %s398_s29, %s517_s7  ;;  %s521_s9 = sshll.u32 %s581_s8, 4  ;;  %s522_s9 = int_to_ptr.vmem [resolvable:$false] %s521_s9 }
  0x18   : > { %v205_v5 = vcombine.high %v196_v4, %v196_v4  ;;  %s523_s10 = scalar_lea.vmem %s522_s9, 1280  ;;  %p524_p0 = scmp.lt.s32.totalorder %s398_s29, %s522_s9 }
  0x19   : > { %p519_p12 = pnand %p518_p11, %p645_p5  ;;  %p525_p1 = scmp.lt.s32.totalorder %s523_s10, %s517_s7 }
  0x1a   : > { %296 = vperm.xlu0 %515, %v293_v3   ;;  %462 = vmatprep.subr.msk.mxu0 %vm210_vm0, %v205_v5 }
  0x1b   : > { %465 = vmatprep.subr.msk.mxu1 %vm210_vm0, %v205_v5  ;;  %463 = vmatpush1.msk.msra.mxu0 %vm210_vm0, %v196_v4  ;;  %p520_p13 = pneg %p519_p12  ;;  %p526_p2 = por %p525_p1, %p524_p0 }
  0x1c   : > { %466 = vmatpush1.msk.msra.mxu1 %vm210_vm0, %v196_v4  ;;  %464 = vmatmul.mubr.msk.f32.vlgmr.msra.gmra.mxu0 %vm206_vm1, %v197_v6 }
  0x1d   : > { %467 = vmatmul.mubr.msk.f32.vlgmr.msra.gmra.mxu1 %vm206_vm1, %v292_v7  ;;  %p527_p3 = pnand %p526_p2, %p520_p13 }
  0x91   : > { %v202_v9 = vpop.permute.xlu0 %201 }
  0x95   : > { %v297_v10 = vpop.permute.xlu0 %296 }
  0xdc   : > { %v281_v11 = vpop.f32.mrf.mxu0 }
  0xdd   : > { %v368_v12 = vpop.f32.mrf.mxu1  ;;  %v282_v13 = vadd.f32 %v281_v11, %v202_v9 }
  0xde   : > { %v369_v14 = vadd.f32 %v368_v12, %v297_v10  ;;  %v283_v15 = vpop.f32.mrf.mxu0 }
  0xdf   : > { %v370_v16 = vpop.f32.mrf.mxu1  ;;  %v286_v17 = vmul.f32 0.1, %v282_v13  ;;  %v284_v19 = vadd.f32 %v283_v15, %v202_v9 }
  0xe0   : > { %v373_v18 = vmul.f32 0.1, %v369_v14  ;;  %v371_v20 = vadd.f32 %v370_v16, %v297_v10 }
  0xe1   : > { %v288_v21 = vmax.f32 %v282_v13, %v286_v17  ;;  %v287_v23 = vmul.f32 0.1, %v284_v19 }
  0xe2   : > { %v375_v22 = vmax.f32 %v369_v14, %v373_v18  ;;  %v374_v24 = vmul.f32 0.1, %v371_v20 }
  0xe3   : > { %290 = vst [vmem:[%s190_s27] sm:$0xff] %v288_v21  ;;  %v289_v25 = vmax.f32 %v284_v19, %v287_v23 }
  0xe4   : > { %377 = vst [vmem:[%s190_s27 + $0x10] sm:$0xff] %v375_v22  ;;  %v376_v26 = vmax.f32 %v371_v20, %v374_v24 }
  0xe5   : > { %291 = vst [vmem:[%s190_s27 + $0x8] sm:$0xff] %v289_v25 }
  0xe6   : > { %378 = vst [vmem:[%s190_s27 + $0x18] sm:$0xff] %v376_v26 }
  0xe7   : > { %530 = shalt.err (!%p527_p3)
}
  0xe8   : > { %s531_s11 = scalar_lea.hbm %s682_s6, 640  ;;  %s535_s14 = scalar_lea.hbm %s723_s4, 1280 }
  0xe9   : > { %p532_p4 = scmp.ne.s32.totalorder %s682_s6, %s531_s11  ;;  %p536_p9 = scmp.lt.s32.totalorder %s682_s6, %s723_s4 }
  0xea   : > { %p537_p10 = scmp.lt.s32.totalorder %s535_s14, %s531_s11 }
  0xeb   : > { %p533_p7 = pnand %p532_p4, %p645_p5 }
  0xec   : > { %p538_p11 = por %p537_p10, %p536_p9 }
  0xed   : > { %p534_p8 = pneg %p533_p7 }
  0xef   : > { %p539_p12 = pnand %p538_p11, %p534_p8 }
  0xf1   : > { %542 = shalt.err (!%p539_p12)
}
  0xf2   : > { %474 = dma.vmem_to_hbm [thread:$0]  (%p645_p5), %s398_s29, 640, %s682_s6, %s383_s19  }
  0xf3 PF: > { %p480_p13 = scmp.ge.s32.totalorder %s577_s18, 2  ;;  %s409_s23 = sand.u32 1, %s565_s15  }
  0xf4   : > { %s410_s27 = scalar_lea.sflag [#allocation3], %s409_s23 }
  0xf5   : > { %p477_p0 = pnand %p480_p13, %p649_p6 }
  0xf7   : > { %p478_p1 = pneg %p477_p0 }
  0xf9   : > { %560 = dma.done.wait (%p478_p1), %s410_s27, 640  }
  0xfa   : > { %562 = vsyncadd (%p478_p1), %s410_s27, 4294966656  ;;  %p14_p2 = scmp.ge.s32.totalorder %s632_s21, 4   ;;  %s726_s15 = smov %s569_s16 }
  0xfb   : > { %s727_s16 = smov %s573_s17  ;;  %s728_s17 = smov %s643_s24 }
  0xfc   : > { %s729_s18 = smov %s632_s21  ;;  %16 = sbr.rel (!%p14_p2) target bundleno = 3 (0x3), region = 71 }
 0x101   :  { %415 = vsyncpa [#allocation3], 1 }
 0x102   :  { %417 = vsyncpa [#allocation3 + $0x1], 1 }

</bundles_post_ra>
